<compile_context>
chip_gen: v7x
topology: tpu7x:2x2x1
jax: 0.10.0
libtpu: 0.0.40
codegen_flags: <defaults>
</compile_context>

<pallas_src>
import functools

import jax
import jax.numpy as jnp
from jax.experimental import pallas as pl
from jax.experimental.pallas import tpu as pltpu

LANE = 128
DEFAULT_TILE_ROWS = 512  # 3 f32 inputs x 2 buffers x 512x128x4B ~ 1.5 MiB -> fits v5e's 16 MiB scoped VMEM


def _corr_loss_kernel(out_ref, lab_ref, grp_ref, res_ref, acc_ref, *,
                      unique_labels, n_valid, tile_rows):
    i = pl.program_id(0)
    nsteps = pl.num_programs(0)

    # Cast narrow input dtypes to f32/int32 on the VMEM tile (VPU work, hidden under DMA).
    x = out_ref[...].astype(jnp.float32)      # (tr, 128) logits
    lab = lab_ref[...].astype(jnp.int32)      # (tr, 128) labels
    g = grp_ref[...].astype(jnp.float32)      # (tr, 128) group attribute

    # nn.LogSigmoid(x) = log(sigmoid(x)), numerically stable form.
    o = jnp.minimum(x, 0.0) - jnp.log1p(jnp.exp(-jnp.abs(x)))

    # Global flat index of every element in this tile -> mask the lane-pad /
    # ragged-last-block slots (their contents are undefined; jnp.where selects,
    # so garbage never propagates).
    row = jax.lax.broadcasted_iota(jnp.int32, x.shape, 0)
    col = jax.lax.broadcasted_iota(jnp.int32, x.shape, 1)
    gidx = (i * tile_rows + row) * LANE + col
    valid = gidx < n_valid

    # Hoist shared products out of the per-label loop.
    og = o * g
    oo = o * o
    gg = g * g
    ones = jnp.ones_like(o)

    parts = []
    for the_label in unique_labels:           # static python loop (<= 2 iters)
        m = jnp.logical_and(valid, lab == the_label)

        def msum(v, m=m):
            # sublane-direction reduce only; cross-lane reduce deferred to finalize
            return jnp.sum(jnp.where(m, v, 0.0), axis=0, keepdims=True)   # (1,128)

        parts.extend([msum(ones), msum(o), msum(g), msum(og), msum(oo), msum(gg)])
    p = jnp.concatenate(parts, axis=0)        # (6*n_labels, 128)

    @pl.when(i == 0)
    def _init():
        acc_ref[...] = jnp.zeros_like(acc_ref)

    acc_ref[...] += p

    @pl.when(i == nsteps - 1)
    def _finalize():
        # single cross-lane (XLU) reduction over the accumulated partials
        sums = jnp.sum(acc_ref[...], axis=1, keepdims=True)   # (6*n_labels, 1)
        total = jnp.zeros((1, 1), jnp.float32)
        for li in range(len(unique_labels)):
            b = 6 * li
            n = sums[b + 0:b + 1, :]
            so = sums[b + 1:b + 2, :]
            sg = sums[b + 2:b + 3, :]
            sog = sums[b + 3:b + 4, :]
            soo = sums[b + 4:b + 5, :]
            sgg = sums[b + 5:b + 6, :]

            mean_o = so / n
            mean_g = sg / n
            numerator = sog / n - mean_o * mean_g
            # unbiased variance (torch.std default, divisor n-1); n==1 -> NaN, same as torch
            var_o = (soo - n * mean_o * mean_o) / (n - 1.0)
            var_g = (sgg - n * mean_g * mean_g) / (n - 1.0)
            denom = jnp.sqrt(jnp.maximum(var_o, 0.0)) * jnp.sqrt(jnp.maximum(var_g, 0.0))

            contrib = jnp.abs(numerator / (denom + 1e-6))
            # TODO(synk): torch prints 'Skipping regularization due to no samples';
            # here the empty-label branch contributes 0 via a select.
            contrib = jnp.where(n > 0.0, contrib, jnp.zeros_like(contrib))
            total = total + contrib
        res_ref[...] = total


def corr_loss(outputs, labels, group, fair_criteria="EqOdd", *,
              tile_rows=DEFAULT_TILE_ROWS):
    assert fair_criteria in ("EqOdd", "EqOpp")
    unique_labels = (0, 1) if fair_criteria == "EqOdd" else (0,)

    # Keep original dtypes (bf16 / int8 friendly) -- casts happen on VMEM tiles
    # inside the kernel, not as extra HBM passes here.
    out_flat = outputs.reshape(-1)
    lab_flat = labels.reshape(-1)
    grp_flat = group.reshape(-1)
    n = out_flat.shape[0]

    rows = max(1, pl.cdiv(n, LANE))
    pad = rows * LANE - n
    if pad:
        # Only when N is not lane-aligned; padded slots are masked in-kernel via
        # the global-index < N test, so pad values are irrelevant.
        out_flat = jnp.pad(out_flat, (0, pad))
        lab_flat = jnp.pad(lab_flat, (0, pad))
        grp_flat = jnp.pad(grp_flat, (0, pad))
    x = out_flat.reshape(rows, LANE)
    lab = lab_flat.reshape(rows, LANE)
    grp = grp_flat.reshape(rows, LANE)

    # Tile the row axis. Full-array blocks are always legal; partial tiles are
    # rounded to a multiple of 32 (covers the int8 (32,128) tiling minimum).
    if rows <= tile_rows:
        tr = rows
    else:
        tr = max(32, (tile_rows // 32) * 32)
        if tr > rows:
            tr = rows
    grid = (pl.cdiv(rows, tr),)

    kernel = functools.partial(
        _corr_loss_kernel,
        unique_labels=unique_labels,
        n_valid=n,
        tile_rows=tr,
    )

    res = pl.pallas_call(
        kernel,
        out_shape=jax.ShapeDtypeStruct((1, 1), jnp.float32),
        grid=grid,
        in_specs=[
            pl.BlockSpec((tr, LANE), lambda i: (i, 0)),
            pl.BlockSpec((tr, LANE), lambda i: (i, 0)),
            pl.BlockSpec((tr, LANE), lambda i: (i, 0)),
        ],
        out_specs=pl.BlockSpec((1, 1), lambda i: (0, 0)),
        scratch_shapes=[pltpu.VMEM((6 * len(unique_labels), LANE), jnp.float32)],
        compiler_params=pltpu.CompilerParams(
            dimension_semantics=("arbitrary",)),
    )(x, lab, grp)
    return res.reshape(1)  # matches torch.FloatTensor([...]) shape


def _reference(outputs, labels, group, fair_criteria="EqOdd"):
    o = jax.nn.log_sigmoid(outputs.astype(jnp.float32).reshape(-1))
    g = group.astype(jnp.float32).reshape(-1)
    lab = labels.reshape(-1)
    uls = (0, 1) if fair_criteria == "EqOdd" else (0,)
    total = jnp.zeros((1,), jnp.float32)
    for l in uls:
        m = lab == l
        if int(m.sum()) == 0:
            continue
        ol, gl = o[m], g[m]
        num = (ol * gl).mean() - ol.mean() * gl.mean()
        den = jnp.std(ol, ddof=1) * jnp.std(gl, ddof=1)
        total = total + jnp.abs(num / (den + 1e-6))
    return total


if __name__ == "__main__":
    key = jax.random.PRNGKey(0)
    k1, k2 = jax.random.split(key)

    # Case 1: lane-aligned N (no wrapper pad), multi-tile grid (grid=4),
    # narrow int8 labels/group cast inside the kernel, EqOdd.
    N1 = 16384
    out1 = 2.0 * jax.random.normal(k1, (N1,), jnp.float32)
    lab1 = (jnp.arange(N1, dtype=jnp.int32) % 2).astype(jnp.int8)
    grp1 = (out1 > 0.0).astype(jnp.int8)
    r1 = jax.block_until_ready(corr_loss(out1, lab1, grp1, "EqOdd", tile_rows=32))
    e1 = _reference(out1, lab1, grp1, "EqOdd")
    assert r1.shape == (1,)
    assert jnp.allclose(r1, e1, atol=2e-5, rtol=2e-3), (r1, e1)

    # Case 2: ragged N (tail masking + lane pad), single label (EqOpp), default tile.
    N2 = 300
    out2 = 1.5 * jax.random.normal(k2, (N2,), jnp.float32)
    lab2 = jnp.arange(N2, dtype=jnp.int32) % 2
    grp2 = (out2 < 0.3).astype(jnp.int32)
    r2 = jax.block_until_ready(corr_loss(out2, lab2, grp2, "EqOpp"))
    e2 = _reference(out2, lab2, grp2, "EqOpp")
    assert r2.shape == (1,)
    assert jnp.allclose(r2, e2, atol=2e-5, rtol=2e-3), (r2, e2)

    print("KERNEL_OK")
</pallas_src>

<mosaic_0001>
module attributes {stable_mosaic.version = 11 : i64} {
  func.func @_corr_loss_kernel(%arg0: i32, %arg1: memref<32x128xf32, #tpu.memory_space<vmem>>, %arg2: memref<32x128xi8, #tpu.memory_space<vmem>>, %arg3: memref<32x128xi8, #tpu.memory_space<vmem>>, %arg4: memref<1x1xf32, #tpu.memory_space<vmem>>, %arg5: memref<12x128xf32, #tpu.memory_space<vmem>>) attributes {dimension_semantics = [#tpu.dimension_semantics<arbitrary>], iteration_bounds = array<i64: 4>, scalar_prefetch = 0 : i64, scratch_operands = 1 : i64, tpu.core_type = #tpu.core_type<tc>, window_params = [{transform_indices = @transform_0, window_bounds = array<i64: 32, 128>}, {transform_indices = @transform_1, window_bounds = array<i64: 32, 128>}, {transform_indices = @transform_2, window_bounds = array<i64: 32, 128>}, {pipeline_mode = #tpu.pipeline_mode<synchronous>, transform_indices = @transform_3, window_bounds = array<i64: 1, 1>}]} {
    %c0 = arith.constant 0 : index
    %c0_0 = arith.constant 0 : index
    %0 = vector.load %arg1[%c0, %c0_0] : memref<32x128xf32, #tpu.memory_space<vmem>>, vector<32x128xf32>
    %c0_1 = arith.constant 0 : index
    %c0_2 = arith.constant 0 : index
    %1 = vector.load %arg2[%c0_1, %c0_2] : memref<32x128xi8, #tpu.memory_space<vmem>>, vector<32x128xi8>
    %2 = arith.extsi %1 : vector<32x128xi8> to vector<32x128xi32>
    %c0_3 = arith.constant 0 : index
    %c0_4 = arith.constant 0 : index
    %3 = vector.load %arg3[%c0_3, %c0_4] : memref<32x128xi8, #tpu.memory_space<vmem>>, vector<32x128xi8>
    %4 = arith.sitofp %3 : vector<32x128xi8> to vector<32x128xf32>
    %cst = arith.constant 0.000000e+00 : f32
    %5 = vector.broadcast %cst : f32 to vector<32x128xf32>
    %6 = arith.minimumf %0, %5 : vector<32x128xf32>
    %7 = math.absf %0 : vector<32x128xf32>
    %cst_5 = arith.constant 0.000000e+00 : f32
    %8 = vector.broadcast %cst_5 : f32 to vector<32x128xf32>
    %9 = arith.subf %8, %7 : vector<32x128xf32>
    %10 = math.exp %9 : vector<32x128xf32>
    %11 = math.log1p %10 : vector<32x128xf32>
    %12 = arith.subf %6, %11 : vector<32x128xf32>
    %13 = tpu.iota {dimensions = array<i32: 0>} : vector<32x128xi32>
    %14 = tpu.iota {dimensions = array<i32: 1>} : vector<32x128xi32>
    %c32_i32 = arith.constant 32 : i32
    %15 = arith.muli %arg0, %c32_i32 : i32
    %16 = vector.broadcast %15 : i32 to vector<32x128xi32>
    %17 = arith.addi %16, %13 : vector<32x128xi32>
    %c128_i32 = arith.constant 128 : i32
    %18 = vector.broadcast %c128_i32 : i32 to vector<32x128xi32>
    %19 = arith.muli %17, %18 : vector<32x128xi32>
    %20 = arith.addi %19, %14 : vector<32x128xi32>
    %c16384_i32 = arith.constant 16384 : i32
    %21 = vector.broadcast %c16384_i32 : i32 to vector<32x128xi32>
    %22 = arith.cmpi slt, %20, %21 : vector<32x128xi32>
    %23 = arith.mulf %12, %4 : vector<32x128xf32>
    %24 = arith.mulf %12, %12 : vector<32x128xf32>
    %25 = arith.mulf %4, %4 : vector<32x128xf32>
    %cst_6 = arith.constant 1.000000e+00 : f32
    %26 = vector.broadcast %cst_6 : f32 to vector<32x128xf32>
    %c0_i32 = arith.constant 0 : i32
    %27 = vector.broadcast %c0_i32 : i32 to vector<32x128xi32>
    %28 = arith.cmpi eq, %2, %27 : vector<32x128xi32>
    %29 = arith.andi %22, %28 : vector<32x128xi1>
    %cst_7 = arith.constant 0.000000e+00 : f32
    %30 = vector.broadcast %cst_7 : f32 to vector<32x128xf32>
    %31 = arith.select %29, %26, %30 : vector<32x128xi1>, vector<32x128xf32>
    %cst_8 = arith.constant dense<0.000000e+00> : vector<128xf32>
    %32 = vector.multi_reduction <add>, %31, %cst_8 [0] : vector<32x128xf32> to vector<128xf32>
    %33 = vector.shape_cast %32 : vector<128xf32> to vector<1x128xf32>
    %cst_9 = arith.constant 0.000000e+00 : f32
    %34 = vector.broadcast %cst_9 : f32 to vector<32x128xf32>
    %35 = arith.select %29, %12, %34 : vector<32x128xi1>, vector<32x128xf32>
    %cst_10 = arith.constant dense<0.000000e+00> : vector<128xf32>
    %36 = vector.multi_reduction <add>, %35, %cst_10 [0] : vector<32x128xf32> to vector<128xf32>
    %37 = vector.shape_cast %36 : vector<128xf32> to vector<1x128xf32>
    %cst_11 = arith.constant 0.000000e+00 : f32
    %38 = vector.broadcast %cst_11 : f32 to vector<32x128xf32>
    %39 = arith.select %29, %4, %38 : vector<32x128xi1>, vector<32x128xf32>
    %cst_12 = arith.constant dense<0.000000e+00> : vector<128xf32>
    %40 = vector.multi_reduction <add>, %39, %cst_12 [0] : vector<32x128xf32> to vector<128xf32>
    %41 = vector.shape_cast %40 : vector<128xf32> to vector<1x128xf32>
    %cst_13 = arith.constant 0.000000e+00 : f32
    %42 = vector.broadcast %cst_13 : f32 to vector<32x128xf32>
    %43 = arith.select %29, %23, %42 : vector<32x128xi1>, vector<32x128xf32>
    %cst_14 = arith.constant dense<0.000000e+00> : vector<128xf32>
    %44 = vector.multi_reduction <add>, %43, %cst_14 [0] : vector<32x128xf32> to vector<128xf32>
    %45 = vector.shape_cast %44 : vector<128xf32> to vector<1x128xf32>
    %cst_15 = arith.constant 0.000000e+00 : f32
    %46 = vector.broadcast %cst_15 : f32 to vector<32x128xf32>
    %47 = arith.select %29, %24, %46 : vector<32x128xi1>, vector<32x128xf32>
    %cst_16 = arith.constant dense<0.000000e+00> : vector<128xf32>
    %48 = vector.multi_reduction <add>, %47, %cst_16 [0] : vector<32x128xf32> to vector<128xf32>
    %49 = vector.shape_cast %48 : vector<128xf32> to vector<1x128xf32>
    %cst_17 = arith.constant 0.000000e+00 : f32
    %50 = vector.broadcast %cst_17 : f32 to vector<32x128xf32>
    %51 = arith.select %29, %25, %50 : vector<32x128xi1>, vector<32x128xf32>
    %cst_18 = arith.constant dense<0.000000e+00> : vector<128xf32>
    %52 = vector.multi_reduction <add>, %51, %cst_18 [0] : vector<32x128xf32> to vector<128xf32>
    %53 = vector.shape_cast %52 : vector<128xf32> to vector<1x128xf32>
    %c1_i32 = arith.constant 1 : i32
    %54 = vector.broadcast %c1_i32 : i32 to vector<32x128xi32>
    %55 = arith.cmpi eq, %2, %54 : vector<32x128xi32>
    %56 = arith.andi %22, %55 : vector<32x128xi1>
    %cst_19 = arith.constant 0.000000e+00 : f32
    %57 = vector.broadcast %cst_19 : f32 to vector<32x128xf32>
    %58 = arith.select %56, %26, %57 : vector<32x128xi1>, vector<32x128xf32>
    %cst_20 = arith.constant dense<0.000000e+00> : vector<128xf32>
    %59 = vector.multi_reduction <add>, %58, %cst_20 [0] : vector<32x128xf32> to vector<128xf32>
    %60 = vector.shape_cast %59 : vector<128xf32> to vector<1x128xf32>
    %cst_21 = arith.constant 0.000000e+00 : f32
    %61 = vector.broadcast %cst_21 : f32 to vector<32x128xf32>
    %62 = arith.select %56, %12, %61 : vector<32x128xi1>, vector<32x128xf32>
    %cst_22 = arith.constant dense<0.000000e+00> : vector<128xf32>
    %63 = vector.multi_reduction <add>, %62, %cst_22 [0] : vector<32x128xf32> to vector<128xf32>
    %64 = vector.shape_cast %63 : vector<128xf32> to vector<1x128xf32>
    %cst_23 = arith.constant 0.000000e+00 : f32
    %65 = vector.broadcast %cst_23 : f32 to vector<32x128xf32>
    %66 = arith.select %56, %4, %65 : vector<32x128xi1>, vector<32x128xf32>
    %cst_24 = arith.constant dense<0.000000e+00> : vector<128xf32>
    %67 = vector.multi_reduction <add>, %66, %cst_24 [0] : vector<32x128xf32> to vector<128xf32>
    %68 = vector.shape_cast %67 : vector<128xf32> to vector<1x128xf32>
    %cst_25 = arith.constant 0.000000e+00 : f32
    %69 = vector.broadcast %cst_25 : f32 to vector<32x128xf32>
    %70 = arith.select %56, %23, %69 : vector<32x128xi1>, vector<32x128xf32>
    %cst_26 = arith.constant dense<0.000000e+00> : vector<128xf32>
    %71 = vector.multi_reduction <add>, %70, %cst_26 [0] : vector<32x128xf32> to vector<128xf32>
    %72 = vector.shape_cast %71 : vector<128xf32> to vector<1x128xf32>
    %cst_27 = arith.constant 0.000000e+00 : f32
    %73 = vector.broadcast %cst_27 : f32 to vector<32x128xf32>
    %74 = arith.select %56, %24, %73 : vector<32x128xi1>, vector<32x128xf32>
    %cst_28 = arith.constant dense<0.000000e+00> : vector<128xf32>
    %75 = vector.multi_reduction <add>, %74, %cst_28 [0] : vector<32x128xf32> to vector<128xf32>
    %76 = vector.shape_cast %75 : vector<128xf32> to vector<1x128xf32>
    %cst_29 = arith.constant 0.000000e+00 : f32
    %77 = vector.broadcast %cst_29 : f32 to vector<32x128xf32>
    %78 = arith.select %56, %25, %77 : vector<32x128xi1>, vector<32x128xf32>
    %cst_30 = arith.constant dense<0.000000e+00> : vector<128xf32>
    %79 = vector.multi_reduction <add>, %78, %cst_30 [0] : vector<32x128xf32> to vector<128xf32>
    %80 = vector.shape_cast %79 : vector<128xf32> to vector<1x128xf32>
    %81 = tpu.concatenate %33, %37, %41, %45, %49, %53, %60, %64, %68, %72, %76, %80 in 0 : vector<1x128xf32>, vector<1x128xf32>, vector<1x128xf32>, vector<1x128xf32>, vector<1x128xf32>, vector<1x128xf32>, vector<1x128xf32>, vector<1x128xf32>, vector<1x128xf32>, vector<1x128xf32>, vector<1x128xf32>, vector<1x128xf32> -> vector<12x128xf32>
    %c0_i32_31 = arith.constant 0 : i32
    %82 = arith.cmpi eq, %arg0, %c0_i32_31 : i32
    %83 = arith.extui %82 : i1 to i32
    %c0_i32_32 = arith.constant 0 : i32
    %84 = arith.cmpi ne, %83, %c0_i32_32 : i32
    scf.if %84 {
      %cst_38 = arith.constant 0.000000e+00 : f32
      %91 = vector.broadcast %cst_38 : f32 to vector<12x128xf32>
      %c0_39 = arith.constant 0 : index
      %c0_40 = arith.constant 0 : index
      %92 = vector.load %arg5[%c0_39, %c0_40] : memref<12x128xf32, #tpu.memory_space<vmem>>, vector<12x128xf32>
      tpu.vector_store %arg5[%c0_39, %c0_40], %91 {strides = array<i32>} : memref<12x128xf32, #tpu.memory_space<vmem>>, vector<12x128xf32>,
    } else {
    }
    %c0_33 = arith.constant 0 : index
    %c0_34 = arith.constant 0 : index
    %85 = vector.load %arg5[%c0_33, %c0_34] : memref<12x128xf32, #tpu.memory_space<vmem>>, vector<12x128xf32>
    %86 = arith.addf %85, %81 : vector<12x128xf32>
    %c0_35 = arith.constant 0 : index
    %c0_36 = arith.constant 0 : index
    %87 = vector.load %arg5[%c0_35, %c0_36] : memref<12x128xf32, #tpu.memory_space<vmem>>, vector<12x128xf32>
    tpu.vector_store %arg5[%c0_35, %c0_36], %86 {strides = array<i32>} : memref<12x128xf32, #tpu.memory_space<vmem>>, vector<12x128xf32>,
    %c3_i32 = arith.constant 3 : i32
    %88 = arith.cmpi eq, %arg0, %c3_i32 : i32
    %89 = arith.extui %88 : i1 to i32
    %c0_i32_37 = arith.constant 0 : i32
    %90 = arith.cmpi ne, %89, %c0_i32_37 : i32
    scf.if %90 {
      %c0_38 = arith.constant 0 : index
      %c0_39 = arith.constant 0 : index
      %91 = vector.load %arg5[%c0_38, %c0_39] : memref<12x128xf32, #tpu.memory_space<vmem>>, vector<12x128xf32>
      %cst_40 = arith.constant dense<0.000000e+00> : vector<12xf32>
      %92 = vector.multi_reduction <add>, %91, %cst_40 [1] : vector<12x128xf32> to vector<12xf32>
      %93 = vector.shape_cast %92 : vector<12xf32> to vector<12x1xf32>
      %cst_41 = arith.constant 0.000000e+00 : f32
      %94 = vector.broadcast %cst_41 : f32 to vector<1x1xf32>
      %95 = vector.extract_strided_slice %93 {offsets = [0, 0], sizes = [1, 1], strides = [1, 1]} : vector<12x1xf32> to vector<1x1xf32>
      %96 = vector.extract_strided_slice %93 {offsets = [1, 0], sizes = [1, 1], strides = [1, 1]} : vector<12x1xf32> to vector<1x1xf32>
      %97 = vector.extract_strided_slice %93 {offsets = [2, 0], sizes = [1, 1], strides = [1, 1]} : vector<12x1xf32> to vector<1x1xf32>
      %98 = vector.extract_strided_slice %93 {offsets = [3, 0], sizes = [1, 1], strides = [1, 1]} : vector<12x1xf32> to vector<1x1xf32>
      %99 = vector.extract_strided_slice %93 {offsets = [4, 0], sizes = [1, 1], strides = [1, 1]} : vector<12x1xf32> to vector<1x1xf32>
      %100 = vector.extract_strided_slice %93 {offsets = [5, 0], sizes = [1, 1], strides = [1, 1]} : vector<12x1xf32> to vector<1x1xf32>
      %101 = arith.divf %96, %95 : vector<1x1xf32>
      %102 = arith.divf %97, %95 : vector<1x1xf32>
      %103 = arith.divf %98, %95 : vector<1x1xf32>
      %104 = arith.mulf %101, %102 : vector<1x1xf32>
      %105 = arith.subf %103, %104 : vector<1x1xf32>
      %106 = arith.mulf %95, %101 : vector<1x1xf32>
      %107 = arith.mulf %106, %101 : vector<1x1xf32>
      %108 = arith.subf %99, %107 : vector<1x1xf32>
      %cst_42 = arith.constant 1.000000e+00 : f32
      %109 = vector.broadcast %cst_42 : f32 to vector<1x1xf32>
      %110 = arith.subf %95, %109 : vector<1x1xf32>
      %111 = arith.divf %108, %110 : vector<1x1xf32>
      %112 = arith.mulf %95, %102 : vector<1x1xf32>
      %113 = arith.mulf %112, %102 : vector<1x1xf32>
      %114 = arith.subf %100, %113 : vector<1x1xf32>
      %cst_43 = arith.constant 1.000000e+00 : f32
      %115 = vector.broadcast %cst_43 : f32 to vector<1x1xf32>
      %116 = arith.subf %95, %115 : vector<1x1xf32>
      %117 = arith.divf %114, %116 : vector<1x1xf32>
      %cst_44 = arith.constant 0.000000e+00 : f32
      %118 = vector.broadcast %cst_44 : f32 to vector<1x1xf32>
      %119 = arith.maximumf %111, %118 : vector<1x1xf32>
      %120 = math.sqrt %119 : vector<1x1xf32>
      %cst_45 = arith.constant 0.000000e+00 : f32
      %121 = vector.broadcast %cst_45 : f32 to vector<1x1xf32>
      %122 = arith.maximumf %117, %121 : vector<1x1xf32>
      %123 = math.sqrt %122 : vector<1x1xf32>
      %124 = arith.mulf %120, %123 : vector<1x1xf32>
      %cst_46 = arith.constant 9.99999997E-7 : f32
      %125 = vector.broadcast %cst_46 : f32 to vector<1x1xf32>
      %126 = arith.addf %124, %125 : vector<1x1xf32>
      %127 = arith.divf %105, %126 : vector<1x1xf32>
      %128 = math.absf %127 : vector<1x1xf32>
      %cst_47 = arith.constant 0.000000e+00 : f32
      %129 = vector.broadcast %cst_47 : f32 to vector<1x1xf32>
      %130 = arith.cmpf ogt, %95, %129 : vector<1x1xf32>
      %cst_48 = arith.constant 0.000000e+00 : f32
      %131 = vector.broadcast %cst_48 : f32 to vector<1x1xf32>
      %132 = arith.select %130, %128, %131 : vector<1x1xi1>, vector<1x1xf32>
      %133 = arith.addf %94, %132 : vector<1x1xf32>
      %134 = vector.extract_strided_slice %93 {offsets = [6, 0], sizes = [1, 1], strides = [1, 1]} : vector<12x1xf32> to vector<1x1xf32>
      %135 = vector.extract_strided_slice %93 {offsets = [7, 0], sizes = [1, 1], strides = [1, 1]} : vector<12x1xf32> to vector<1x1xf32>
      %136 = vector.extract_strided_slice %93 {offsets = [8, 0], sizes = [1, 1], strides = [1, 1]} : vector<12x1xf32> to vector<1x1xf32>
      %137 = vector.extract_strided_slice %93 {offsets = [9, 0], sizes = [1, 1], strides = [1, 1]} : vector<12x1xf32> to vector<1x1xf32>
      %138 = vector.extract_strided_slice %93 {offsets = [10, 0], sizes = [1, 1], strides = [1, 1]} : vector<12x1xf32> to vector<1x1xf32>
      %139 = vector.extract_strided_slice %93 {offsets = [11, 0], sizes = [1, 1], strides = [1, 1]} : vector<12x1xf32> to vector<1x1xf32>
      %140 = arith.divf %135, %134 : vector<1x1xf32>
      %141 = arith.divf %136, %134 : vector<1x1xf32>
      %142 = arith.divf %137, %134 : vector<1x1xf32>
      %143 = arith.mulf %140, %141 : vector<1x1xf32>
      %144 = arith.subf %142, %143 : vector<1x1xf32>
      %145 = arith.mulf %134, %140 : vector<1x1xf32>
      %146 = arith.mulf %145, %140 : vector<1x1xf32>
      %147 = arith.subf %138, %146 : vector<1x1xf32>
      %cst_49 = arith.constant 1.000000e+00 : f32
      %148 = vector.broadcast %cst_49 : f32 to vector<1x1xf32>
      %149 = arith.subf %134, %148 : vector<1x1xf32>
      %150 = arith.divf %147, %149 : vector<1x1xf32>
      %151 = arith.mulf %134, %141 : vector<1x1xf32>
      %152 = arith.mulf %151, %141 : vector<1x1xf32>
      %153 = arith.subf %139, %152 : vector<1x1xf32>
      %cst_50 = arith.constant 1.000000e+00 : f32
      %154 = vector.broadcast %cst_50 : f32 to vector<1x1xf32>
      %155 = arith.subf %134, %154 : vector<1x1xf32>
      %156 = arith.divf %153, %155 : vector<1x1xf32>
      %cst_51 = arith.constant 0.000000e+00 : f32
      %157 = vector.broadcast %cst_51 : f32 to vector<1x1xf32>
      %158 = arith.maximumf %150, %157 : vector<1x1xf32>
      %159 = math.sqrt %158 : vector<1x1xf32>
      %cst_52 = arith.constant 0.000000e+00 : f32
      %160 = vector.broadcast %cst_52 : f32 to vector<1x1xf32>
      %161 = arith.maximumf %156, %160 : vector<1x1xf32>
      %162 = math.sqrt %161 : vector<1x1xf32>
      %163 = arith.mulf %159, %162 : vector<1x1xf32>
      %cst_53 = arith.constant 9.99999997E-7 : f32
      %164 = vector.broadcast %cst_53 : f32 to vector<1x1xf32>
      %165 = arith.addf %163, %164 : vector<1x1xf32>
      %166 = arith.divf %144, %165 : vector<1x1xf32>
      %167 = math.absf %166 : vector<1x1xf32>
      %cst_54 = arith.constant 0.000000e+00 : f32
      %168 = vector.broadcast %cst_54 : f32 to vector<1x1xf32>
      %169 = arith.cmpf ogt, %134, %168 : vector<1x1xf32>
      %cst_55 = arith.constant 0.000000e+00 : f32
      %170 = vector.broadcast %cst_55 : f32 to vector<1x1xf32>
      %171 = arith.select %169, %167, %170 : vector<1x1xi1>, vector<1x1xf32>
      %172 = arith.addf %133, %171 : vector<1x1xf32>
      %c0_56 = arith.constant 0 : index
      %c0_57 = arith.constant 0 : index
      %173 = vector.load %arg4[%c0_56, %c0_57] : memref<1x1xf32, #tpu.memory_space<vmem>>, vector<1x1xf32>
      tpu.vector_store %arg4[%c0_56, %c0_57], %172 {strides = array<i32>} : memref<1x1xf32, #tpu.memory_space<vmem>>, vector<1x1xf32>,
    } else {
    }
    return
  }
  func.func @transform_0(%arg0: i32) -> (i32, i32) {
    %c0_i32 = arith.constant 0 : i32
    %c0_i32_0 = arith.constant 0 : i32
    return %arg0, %c0_i32 : i32, i32
  }
  func.func @transform_1(%arg0: i32) -> (i32, i32) {
    %c0_i32 = arith.constant 0 : i32
    %c0_i32_0 = arith.constant 0 : i32
    return %arg0, %c0_i32 : i32, i32
  }
  func.func @transform_2(%arg0: i32) -> (i32, i32) {
    %c0_i32 = arith.constant 0 : i32
    %c0_i32_0 = arith.constant 0 : i32
    return %arg0, %c0_i32 : i32, i32
  }
  func.func @transform_3(%arg0: i32) -> (i32, i32) {
    %c0_i32 = arith.constant 0 : i32
    %c0_i32_0 = arith.constant 0 : i32
    %c0_i32_1 = arith.constant 0 : i32
    return %c0_i32, %c0_i32_0 : i32, i32
  }
}

</mosaic_0001>

<bundles_post_ra>
// kernel: tpu_custom_call.1
= control target key start
LH: loop header
LB: loop body
LE: loop exit
PB: predicated region body
PF: predicated region fallthrough
CT: control target
= control target key end

     0   :  { %8 = vsyncpa [#allocation4], 0  ;;  %s1694_s0 = inlined_call_operand.hbm [shape: f32[128,128], index: 0, kind: input, shape index: {}]   ;;  %s1695_s1 = inlined_call_operand.hbm [shape: s8[128,128], index: 1, kind: input, shape index: {}]   ;;  %s1696_s2 = inlined_call_operand.hbm [shape: s8[128,128], index: 2, kind: input, shape index: {}]   ;;  %s1697_s3 = inlined_call_operand.hbm [shape: f32[1,1], index: 3, kind: output, shape index: {}]  }
   0x1   :  { %10 = vsyncpa [#allocation4 + $0x1], 0 }
   0x2   :  { %11 = vsyncpa [#allocation7], 0 }
   0x3   :  { %13 = vsyncpa [#allocation7 + $0x1], 0 }
   0x4   :  { %14 = vsyncpa [#allocation5], 0  ;;  %s1124_s12 = smov 0   ;;  %s1126_s13 = smov 0  }
   0x5   :  { %s1128_s14 = smov 0   ;;  %s1130_s15 = smov 0  }
   0x6 LB: > { %s1143_s16 = sadd.s32 4294967295, %s1094_s15   ;;  %s1146_s17 = sadd.s32 1, %s1094_s15   ;;  %s1094_s15 = sphi %s1130_s15, %s1740_s15   ;;  %s1090_s14 = sphi %s1128_s14, %s1739_s14   ;;  %s1086_s13 = sphi %s1126_s13, %s1738_s13   ;;  %s1082_s12 = sphi %s1124_s12, %s1737_s12  }
   0x7   : > { %s24_s18 = ssub.s32 %s1094_s15, %s1146_s17  ;;  %s27_s19 = sadd.s32 1, %s1090_s14 }
   0x8   : > { %p25_p0 = scmp.eq.s32.totalorder %s24_s18, 0  ;;  %p34_p1 = scmp.ne.s32.totalorder %s1090_s14, %s1086_s13 }
   0x9   : > { %p35_p2 = scmp.eq.s32.totalorder %s1094_s15, 0  ;;  %p40_p3 = scmp.ne.s32.totalorder %s1086_s13, %s1082_s12 }
   0xa   : > { %s1156_s20 = scalar_select %p25_p0, %s1090_s14, %s27_s19  }
   0xb   : > { %p36_p4 = por %p35_p2, %p34_p1  ;;  %p41_p5 = scmp.eq.s32.totalorder %s1143_s16, 0 }
   0xc   : > { %p858_p6 = scmp.lt.s32.totalorder %s1094_s15, 4  ;;  %s1165_s22 = sand.u32 1, %s1090_s14  }
   0xd   : > { %p1160_p7 = por %p41_p5, %p40_p3  ;;  %s158_s24 = sand.u32 1, %s1094_s15  }
   0xe   : > { %p1167_p8 = pnand %p858_p6, %p36_p4  ;;  %s821_s25 = sshll.u32 %s1165_s22, 3 }
   0xf   : > { %s1700_s21 = scalar_select %p1160_p7, 1, 0 }
  0x10   : > { %s1701_s23 = scalar_select %p1167_p8, 1, 0 }
  0x11   : > { %s822_s26 = sshll.u32 %s1094_s15, 7  ;;  %s162_s27 = scalar_lea.vmem [#allocation6], %s821_s25 }
  0x12   : > { %s169_s28 = sshll.u32 %s162_s27, 4  ;;  %s1181_s4 = scalar_lea.hbm %s1695_s1, %s822_s26  ;;  %s1183_s28 = int_to_ptr.vmem [resolvable:$true] %s169_s28 }
  0x13   : > { %s1185_s5 = scalar_lea.sflag [#allocation7], %s158_s24  ;;  %s936_s6 = scalar_lea.hbm %s1181_s4, 128 }
  0x14   : > { %p937_p9 = scmp.ne.s32.totalorder %s1181_s4, %s936_s6  ;;  %p1191_p10 = pneg %p1167_p8 }
  0x15   : > { %s941_s10 = scalar_lea.hbm %s1695_s1, 512  ;;  %p942_p13 = scmp.lt.u32.totalorder %s1181_s4, %s1695_s1 }
  0x16   : > { %p939_p11 = pnand %p1191_p10, %p937_p9  ;;  %p943_p0 = scmp.lt.u32.totalorder %s941_s10, %s936_s6 }
  0x17   : > { %p945_p2 = scmp.lt.u32.totalorder %s936_s6, %s1181_s4 }
  0x18   : > { %p940_p12 = pneg %p939_p11  ;;  %p944_p1 = por %p943_p0, %p942_p13 }
  0x1a   : > { %p946_p3 = por %p945_p2, %p944_p1 }
  0x1c   : > { %p947_p4 = pnand %p946_p3, %p940_p12 }
  0x1e   : > { %950 = shalt.err (!%p947_p4)
}
  0x1f   : > { %s951_s18 = scalar_lea.vmem %s1183_s28, 128  ;;  %s1096_s19 = smov [#allocation6]  }
  0x20   : > { %p952_p5 = scmp.ne.s32.totalorder %s1183_s28, %s951_s18  ;;  %s956_s24 = sshll.u32 %s1096_s19, 4  ;;  %s957_s24 = int_to_ptr.vmem [resolvable:$false] %s956_s24 }
  0x21   : > { %s958_s27 = scalar_lea.vmem %s957_s24, 256  ;;  %p959_p11 = scmp.lt.s32.totalorder %s1183_s28, %s957_s24 }
  0x22   : > { %p954_p6 = pnand %p952_p5, %p1191_p10  ;;  %p960_p7 = scmp.lt.s32.totalorder %s958_s27, %s951_s18 }
  0x24   : > { %p955_p9 = pneg %p954_p6  ;;  %p961_p13 = por %p960_p7, %p959_p11 }
  0x26   : > { %p962_p0 = pnand %p961_p13, %p955_p9 }
  0x28   : > { %965 = shalt.err (!%p962_p0)
}
  0x29   : > { %854 = dma.hbm_to_vmem [thread:$0]  (!%p1167_p8), %s1181_s4, 128, %s1183_s28, %s1185_s5  }
  0x2a   : > { %s1220_s6 = scalar_lea.hbm %s1696_s2, %s822_s26  ;;  %p825_p7 = scmp.ge.s32.totalorder %s1094_s15, 1 }
  0x2b   : > { %p192_p12 = scmp.lt.s32.totalorder %s1094_s15, 5  ;;  %s818_s8 = sshll.u32 %s1165_s22, 5 }
  0x2c   : > { %s837_s10 = sshll.u32 %s1094_s15, 9  ;;  %s141_s11 = scalar_lea.vmem [#allocation3], %s818_s8 }
  0x2d   : > { %p1225_p1 = pnand %p825_p7, %p192_p12  ;;  %s148_s12 = sshll.u32 %s141_s11, 4  ;;  %s1235_s12 = int_to_ptr.vmem [resolvable:$true] %s148_s12 }
  0x2e   : > { %s1233_s28 = scalar_lea.hbm %s1694_s0, %s837_s10  ;;  %s138_s26 = scalar_lea.sflag [#allocation4], %s1165_s22 }
  0x2f   : > { %s1703_s9 = scalar_select %p1225_p1, 1, 0 }
  0x30   : > { %s966_s4 = scalar_lea.hbm %s1233_s28, 512  ;;  %s971_s27 = scalar_lea.hbm %s1694_s0, 2048 }
  0x31   : > { %p967_p2 = scmp.ne.s32.totalorder %s1233_s28, %s966_s4  ;;  %p972_p5 = scmp.lt.u32.totalorder %s1233_s28, %s1694_s0 }
  0x32   : > { %p973_p6 = scmp.lt.u32.totalorder %s971_s27, %s966_s4  ;;  %p975_p11 = scmp.lt.u32.totalorder %s966_s4, %s1233_s28 }
  0x33   : > { %p969_p3 = pnand %p967_p2, %p1191_p10 }
  0x34   : > { %p974_p9 = por %p973_p6, %p972_p5 }
  0x35   : > { %p970_p4 = pneg %p969_p3 }
  0x36   : > { %p976_p13 = por %p975_p11, %p974_p9 }
  0x38   : > { %p977_p0 = pnand %p976_p13, %p970_p4 }
  0x3a   : > { %980 = shalt.err (!%p977_p0)
}
  0x3b   : > { %s981_s8 = scalar_lea.vmem %s1235_s12, 512  ;;  %s1097_s10 = smov [#allocation3]  }
  0x3c   : > { %p982_p7 = scmp.ne.s32.totalorder %s1235_s12, %s981_s8  ;;  %s986_s11 = sshll.u32 %s1097_s10, 4  ;;  %s987_s11 = int_to_ptr.vmem [resolvable:$false] %s986_s11 }
  0x3d   : > { %s988_s18 = scalar_lea.vmem %s987_s11, 1024  ;;  %p989_p3 = scmp.lt.s32.totalorder %s1235_s12, %s987_s11 }
  0x3e   : > { %p984_p12 = pnand %p982_p7, %p1191_p10  ;;  %p990_p1 = scmp.lt.s32.totalorder %s988_s18, %s981_s8 }
  0x40   : > { %p985_p2 = pneg %p984_p12  ;;  %p991_p5 = por %p990_p1, %p989_p3 }
  0x42   : > { %p992_p6 = pnand %p991_p5, %p985_p2 }
  0x44   : > { %995 = shalt.err (!%p992_p6)
}
  0x45   : > { %s1098_s19 = smov 128   ;;  %s1099_s4 = smov 8  }
  0x46   : > { %851 = dma.hbm_to_vmem [thread:$0]  (!%p1167_p8), %s1233_s28, 512, %s1235_s12, %s138_s26, %s1098_s19, %s1098_s19, %s1099_s4  }
  0x47   : > { %s180_s15 = scalar_lea.vmem [#allocation8], %s821_s25  ;;  %s996_s27 = scalar_lea.hbm %s1220_s6, 128 }
  0x48   : > { %s187_s24 = sshll.u32 %s180_s15, 4  ;;  %p997_p1 = scmp.ne.s32.totalorder %s1220_s6, %s996_s27  ;;  %s188_s24 = int_to_ptr.vmem [resolvable:$true] %s187_s24 }
  0x49   : > { %s1001_s8 = scalar_lea.hbm %s1696_s2, 512  ;;  %p1002_p11 = scmp.lt.u32.totalorder %s1220_s6, %s1696_s2 }
  0x4a   : > { %p999_p4 = pnand %p997_p1, %p1191_p10  ;;  %p1003_p13 = scmp.lt.u32.totalorder %s1001_s8, %s996_s27 }
  0x4b   : > { %p1005_p7 = scmp.lt.u32.totalorder %s996_s27, %s1220_s6 }
  0x4c   : > { %p1000_p9 = pneg %p999_p4  ;;  %p1004_p0 = por %p1003_p13, %p1002_p11 }
  0x4e   : > { %p1006_p12 = por %p1005_p7, %p1004_p0 }
  0x50   : > { %p1007_p2 = pnand %p1006_p12, %p1000_p9 }
  0x52   : > { %1010 = shalt.err (!%p1007_p2)
}
  0x53   : > { %s1011_s22 = scalar_lea.vmem %s188_s24, 128  ;;  %s1100_s25 = smov [#allocation8]  }
  0x54   : > { %p1012_p3 = scmp.ne.s32.totalorder %s188_s24, %s1011_s22  ;;  %s1016_s12 = sshll.u32 %s1100_s25, 4  ;;  %s1017_s12 = int_to_ptr.vmem [resolvable:$false] %s1016_s12 }
  0x55   : > { %s1018_s28 = scalar_lea.vmem %s1017_s12, 256  ;;  %p1019_p1 = scmp.lt.s32.totalorder %s188_s24, %s1017_s12 }
  0x56   : > { %p1014_p5 = pnand %p1012_p3, %p1191_p10  ;;  %p1020_p4 = scmp.lt.s32.totalorder %s1018_s28, %s1011_s22 }
  0x58   : > { %p1015_p6 = pneg %p1014_p5  ;;  %p1021_p8 = por %p1020_p4, %p1019_p1 }
  0x5a   : > { %p1022_p11 = pnand %p1021_p8, %p1015_p6 }
  0x5c   : > { %1025 = shalt.err (!%p1022_p11)
}
  0x5d   : > { %p1704_p13 = scmp.ne.s32.totalorder %s1701_s23, 0  ;;  %p1705_p9 = scmp.ne.s32.totalorder %s1703_s9, 0 }
  0x5e   : > { %s198_s7 = sand.u32 (!%p1705_p9), 1, %s1086_s13   ;;  %p1706_p10 = scmp.ne.s32.totalorder (!%p1705_p9), %s1700_s21, 0 }
  0x5f   : > { %857 = dma.hbm_to_vmem [thread:$0]  (!%p1704_p13), %s1220_s6, 128, %s188_s24, %s1185_s5  }
  0x60   : > { %196 = sbr.rel (%p1705_p9) target bundleno = 443 (0x1bb), region = 32  ;;  %s826_s26 = sshll.u32 (!%p1705_p9), %s198_s7, 5 }
  0x61   : > { %s199_s18 = scalar_lea.sflag (!%p1705_p9), [#allocation4], %s198_s7  ;;  %s1284_s19 = scalar_lea.vmem (!%p1705_p9), [#allocation3], %s826_s26 }
  0x67   : > { %1069 = dma.done.wait (%p1706_p10), %s199_s18, 512  }
  0x68   : > { %1071 = vsyncadd (%p1706_p10), %s199_s18, 4294966784  ;;  %s207_s23 = sand.u32 1, %s1143_s16   ;;  %s827_s4 = sshll.u32 %s198_s7, 3 }
  0x69   : > { %s208_s5 = scalar_lea.sflag [#allocation7], %s207_s23  ;;  %s211_s6 = scalar_lea.vmem [#allocation6], %s827_s4 }
  0x6a   : > { %1073 = dma.done.wait (%p1706_p10), %s208_s5, 256  }
  0x6b   : > { %1075 = vsyncadd (%p1706_p10), %s208_s5, 4294967040  ;;  %v327_v0 = vlaneseq  ;;  %s829_s9 = sshll.u32 %s1143_s16, 5  ;;  %v1297_v9 = vld [vmem:[%s1284_s19] sm:$0xff]  ;;  %v1300_v11 = vld [vmem:[%s1284_s19 + $0x8] sm:$0xff]  ;;  %s220_s21 = scalar_lea.vmem [#allocation8], %s827_s4  ;;  %v1101_v57 = vmov 0.0  }
  0x6c   : > { %v335_v1 = vstv %s829_s9  ;;  %v1302_v12 = vld [vmem:[%s211_s6] sm:$0xff]  ;;  %v258_v13 = vld [vmem:[%s220_s21] sm:$0xff]  ;;  %v267_v14 = vmin.f32 %v1297_v9, 0.0  ;;  %v268_v19 = vmin.f32 %v1300_v11, 0.0  ;;  %v271_v28 = vand.u32 2147483647, %v1297_v9 }
  0x6d   : > { %v328_v2 = vshrl.u32 %v327_v0, 7  ;;  %v333_v7 = vand.u32 127, %v327_v0  ;;  %v254_v17 = vunpack.c.0.s8 %v1302_v12  ;;  %v255_v18 = vunpack.c.1.s8 %v1302_v12  ;;  %v1311_v21 = vld [vmem:[%s1284_s19 + $0x10] sm:$0xff]  ;;  %v1314_v22 = vld [vmem:[%s1284_s19 + $0x18] sm:$0xff]  ;;  %p830_p8 = scmp.ne.s32.totalorder %s1143_s16, 0 }
  0x6e   : > { %v259_v23 = vunpack.c.0.s8 %v258_v13  ;;  %v260_v24 = vunpack.c.1.s8 %v258_v13  ;;  %v261_v25 = vunpack.c.2.s8 %v258_v13  ;;  %v262_v26 = vunpack.c.3.s8 %v258_v13 }
  0x6f   : > { %v329_v3 = vadd.s32 8, %v328_v2  ;;  %v330_v4 = vadd.s32 16, %v328_v2  ;;  %v331_v5 = vadd.s32 24, %v328_v2  ;;  %v336_v6 = vadd.s32 %v335_v1, %v328_v2 }
  0x70   : > { %v256_v27 = vunpack.c.2.s8 %v1302_v12  ;;  %v272_v29 = vand.u32 2147483647, %v1300_v11  ;;  %v257_v31 = vunpack.c.3.s8 %v1302_v12  ;;  %v1320_v32 = vcvt.s32.f32 %v259_v23 }
  0x71   : > { %v340_v8 = vmul.u32 128, %v336_v6  ;;  %v337_v10 = vadd.s32 %v335_v1, %v329_v3  ;;  %v338_v15 = vadd.s32 %v335_v1, %v330_v4  ;;  %v339_v16 = vadd.s32 %v335_v1, %v331_v5 }
  0x72   : > { %v1322_v33 = vcvt.s32.f32 %v260_v24  ;;  %v1324_v34 = vcvt.s32.f32 %v261_v25  ;;  %v273_v35 = vand.u32 2147483647, %v1311_v21  ;;  %v274_v36 = vand.u32 2147483647, %v1314_v22 }
  0x73   : > { %v1308_v20 = vadd.s32 %v340_v8, %v333_v7  ;;  %v341_v30 = vmul.u32 128, %v337_v10  ;;  %v275_v37 = vsub.f32 0.0, %v271_v28  ;;  %v276_v38 = vsub.f32 0.0, %v272_v29 }
  0x74   : > { %v1328_v39 = vcvt.s32.f32 %v262_v26  ;;  %v342_v40 = vmul.u32 128, %v338_v15  ;;  %v343_v41 = vmul.u32 128, %v339_v16  ;;  %v277_v43 = vsub.f32 0.0, %v273_v35 }
  0x75   : > { %v345_v42 = vadd.s32 %v341_v30, %v333_v7  ;;  %v278_v44 = vsub.f32 0.0, %v274_v36  ;;  %v279_v45 = vmul.f32 1.442695, %v275_v37  ;;  %v281_v46 = vmul.f32 1.442695, %v276_v38 }
  0x76   : > { %v346_v47 = vadd.s32 %v342_v40, %v333_v7  ;;  %v1330_v48 = vadd.s32 %v343_v41, %v333_v7  ;;  %vm348_vm0 = vcmp.lt.s32.totalorder %v1308_v20, 16384  ;;  %v283_v49 = vmul.f32 1.442695, %v277_v43 }
  0x77   : > { %vm349_vm1 = vcmp.lt.s32.totalorder %v345_v42, 16384  ;;  %898 = vpow2.f32 %v279_v45  ;;  %v285_v50 = vmul.f32 1.442695, %v278_v44  ;;  %v1335_v51 = vmul.f32 %v1320_v32, %v1320_v32 }
  0x78   : > { %900 = vpow2.f32 %v281_v46  ;;  %vm350_vm2 = vcmp.lt.s32.totalorder %v346_v47, 16384  ;;  %vm351_vm3 = vcmp.lt.s32.totalorder %v1330_v48, 16384  ;;  %v1340_v52 = vmul.f32 %v1322_v33, %v1322_v33 }
  0x79   : > { %902 = vpow2.f32 %v283_v49  ;;  %v1344_v53 = vmul.f32 %v1324_v34, %v1324_v34  ;;  %vm364_vm4 = vcmp.eq.s32.totalorder %v254_v17, 0  ;;  %vm365_vm5 = vcmp.eq.s32.totalorder %v255_v18, 0 }
  0x7a   : > { %904 = vpow2.f32 %v285_v50  ;;  %v1348_v54 = vmul.f32 %v1328_v39, %v1328_v39  ;;  %vm366_vm6 = vcmp.eq.s32.totalorder %v256_v27, 0  ;;  %vm367_vm7 = vcmp.eq.s32.totalorder %v257_v31, 0  ;;  %vm1354_vm8 = vmand %vm348_vm0, %vm364_vm4 }
  0x7b   : > { %vm1359_vm9 = vmand %vm349_vm1, %vm365_vm5  ;;  %v372_v58 = vsel %vm1354_vm8, 1.0, %v1101_v57  ;;  %v398_v59 = vsel %vm1354_vm8, %v1320_v32, 0.0  ;;  %v437_v60 = vsel %vm1354_vm8, %v1335_v51, 0.0  ;;  %vm1371_vm10 = vcmp.eq.s32.totalorder %v254_v17, 1 }
  0x7c   : > { %vm1376_vm11 = vmand %vm350_vm2, %vm366_vm6  ;;  %v373_v63 = vsel %vm1359_vm9, 1.0, %v1101_v57  ;;  %v399_v0 = vsel %vm1359_vm9, %v1322_v33, 0.0  ;;  %v438_v1 = vsel %vm1359_vm9, %v1340_v52, 0.0  ;;  %vm1388_vm12 = vcmp.eq.s32.totalorder %v255_v18, 1 }
  0x7d   : > { %vm1394_vm13 = vmand %vm351_vm3, %vm367_vm7  ;;  %v374_v4 = vsel %vm1376_vm11, 1.0, %v1101_v57  ;;  %v376_v5 = vadd.f32 %v373_v63, %v372_v58  ;;  %v400_v6 = vsel %vm1376_vm11, %v1324_v34, 0.0  ;;  %v402_v7 = vadd.f32 %v399_v0, %v398_v59 }
  0x7e   : > { %v269_v8 = vmin.f32 %v1311_v21, 0.0  ;;  %v375_v10 = vsel %vm1394_vm13, 1.0, %v1101_v57  ;;  %v401_v13 = vsel %vm1394_vm13, %v1328_v39, 0.0  ;;  %vm452_vm14 = vcmp.eq.s32.totalorder %v256_v27, 1  ;;  %vm1413_vm15 = vmand %vm348_vm0, %vm1371_vm10 }
  0x7f   : > { %v377_v16 = vadd.f32 %v376_v5, %v374_v4  ;;  %v403_v17 = vadd.f32 %v402_v7, %v400_v6  ;;  %v439_v18 = vsel %vm1376_vm11, %v1344_v53, 0.0  ;;  %v441_v23 = vadd.f32 %v438_v1, %v437_v60  ;;  %vm1423_vm4 = vmand %vm349_vm1, %vm1388_vm12 }
  0x80   : > { %v270_v20 = vmin.f32 %v1314_v22, 0.0  ;;  %v440_v25 = vsel %vm1394_vm13, %v1348_v54, 0.0  ;;  %vm1433_vm0 = vcmp.eq.s32.totalorder %v257_v31, 1  ;;  %v458_v27 = vsel %vm1413_vm15, 1.0, %v1101_v57  ;;  %vm1440_vm1 = vmand %vm350_vm2, %vm452_vm14 }
  0x81   : > { %v899_v28 = vpop.eup %898  ;;  %v378_v29 = vadd.f32 %v377_v16, %v375_v10  ;;  %v459_v35 = vsel %vm1423_vm4, 1.0, %v1101_v57  ;;  %v484_v12 = vsel %vm1413_vm15, %v1320_v32, 0.0  ;;  %v485_v31 = vsel %vm1423_vm4, %v1322_v33, 0.0  ;;  %vm1456_vm2 = vmand %vm351_vm3, %vm1433_vm0 }
  0x82   : > { %v901_v36 = vpop.eup %900  ;;  %v287_v37 = vadd.f32 1.0, %v899_v28  ;;  %v290_v38 = vmul.f32 -0.5, %v899_v28  ;;  %v404_v40 = vadd.f32 %v403_v17, %v401_v13  ;;  %v442_v41 = vadd.f32 %v441_v23, %v439_v18 }
  0x83   : > { %v903_v42 = vpop.eup %902  ;;  %v293_v43 = vand.u32 2147483647, %v899_v28  ;;  %v296_v44 = vadd.f32 1.0, %v901_v36  ;;  %v299_v45 = vmul.f32 -0.5, %v901_v36  ;;  %v302_v46 = vand.u32 2147483647, %v901_v36 }
  0x84   : > { %v905_v49 = vpop.eup %904  ;;  %906 = vlog2.f32 %v287_v37  ;;  %v305_v50 = vadd.f32 1.0, %v903_v42  ;;  %v379_v58 = vrot.slane %v378_v29, 4  ;;  %v460_v59 = vsel %vm1440_vm1, 1.0, %v1101_v57 }
  0x85   : > { %v291_v60 = vadd.f32 1.0, %v290_v38  ;;  %908 = vlog2.f32 %v296_v44  ;;  %v300_v61 = vadd.f32 1.0, %v299_v45  ;;  %v308_v63 = vmul.f32 -0.5, %v903_v42 }
  0x86   : > { %910 = vlog2.f32 %v305_v50  ;;  %v311_v0 = vand.u32 2147483647, %v903_v42  ;;  %v314_v1 = vadd.f32 1.0, %v905_v49  ;;  %v461_v48 = vsel %vm1456_vm2, 1.0, %v1101_v57 }
  0x87   : > { %vm1464_vm3 = vcmp.lt.f32.partialorder %v293_v43, 0.0004427343  ;;  %vm1468_vm5 = vcmp.lt.f32.partialorder %v302_v46, 0.0004427343  ;;  %v309_v5 = vadd.f32 1.0, %v308_v63  ;;  %v317_v6 = vmul.f32 -0.5, %v905_v49 }
  0x88   : > { %912 = vlog2.f32 %v314_v1  ;;  %v320_v7 = vand.u32 2147483647, %v905_v49  ;;  %v380_v10 = vadd.f32 %v379_v58, %v378_v29  ;;  %v405_v13 = vrot.slane %v404_v40, 4 }
  0x89   : > { %v292_v16 = vmul.f32 %v899_v28, %v291_v60  ;;  %v301_v17 = vmul.f32 %v901_v36, %v300_v61  ;;  %vm1472_vm6 = vcmp.lt.f32.partialorder %v311_v0, 0.0004427343  ;;  %v443_v57 = vadd.f32 %v442_v41, %v440_v25 }
  0x8a   : > { %v381_v23 = vrot.slane %v380_v10, 2  ;;  %v406_v26 = vadd.f32 %v405_v13, %v404_v40  ;;  %v462_v37 = vadd.f32 %v459_v35, %v458_v27  ;;  %v486_v38 = vsel %vm1440_vm1, %v1324_v34, 0.0 }
  0x8b   : > { %v310_v43 = vmul.f32 %v903_v42, %v309_v5  ;;  %v318_v44 = vadd.f32 1.0, %v317_v6  ;;  %v444_v45 = vrot.slane %v443_v57, 4  ;;  %v488_v46 = vadd.f32 %v485_v31, %v484_v12 }
  0x8c   : > { %vm1479_vm7 = vcmp.lt.f32.partialorder %v320_v7, 0.0004427343  ;;  %v382_v28 = vadd.f32 %v381_v23, %v380_v10  ;;  %v407_v36 = vrot.slane %v406_v26, 2  ;;  %v463_v50 = vadd.f32 %v462_v37, %v460_v59 }
  0x8d   : > { %v445_v58 = vadd.f32 %v444_v45, %v443_v57  ;;  %v487_v25 = vsel %vm1456_vm2, %v1328_v39, 0.0  ;;  %v489_v27 = vadd.f32 %v488_v46, %v486_v38  ;;  %v523_v35 = vsel %vm1413_vm15, %v1335_v51, 0.0 }
  0x8e   : > { %v907_v40 = vpop.eup %906  ;;  %v383_v41 = vrot.slane %v382_v28, 1  ;;  %v1489_v12 = vadd.f32 %v407_v36, %v406_v26  ;;  %v464_v31 = vadd.f32 %v463_v50, %v461_v48  ;;  %v524_v42 = vsel %vm1423_vm4, %v1340_v52, 0.0 }
  0x8f   : > { %v909_v59 = vpop.eup %908  ;;  %v289_v60 = vmul.f32 0.6931472, %v907_v40  ;;  %v319_v61 = vmul.f32 %v905_v49, %v318_v44  ;;  %v446_v63 = vrot.slane %v445_v58, 2  ;;  %v525_v0 = vsel %vm1440_vm1, %v1344_v53, 0.0 }
  0x90   : > { %v911_v1 = vpop.eup %910  ;;  %v298_v5 = vmul.f32 0.6931472, %v909_v59  ;;  %v465_v51 = vrot.slane %v464_v31, 4  ;;  %v1497_v6 = vadd.f32 %v489_v27, %v487_v25  ;;  %v526_v48 = vsel %vm1456_vm2, %v1348_v54, 0.0 }
  0x91   : > { %v295_v52 = vsel %vm1464_vm3, %v292_v16, %v289_v60  ;;  %v307_v7 = vmul.f32 0.6931472, %v911_v1  ;;  %v1504_v10 = vadd.f32 %v383_v41, %v382_v28  ;;  %v1506_v49 = vadd.f32 %v524_v42, %v523_v35 }
  0x92   : > { %v913_v13 = vpop.eup %912  ;;  %v304_v57 = vsel %vm1468_vm5, %v301_v17, %v298_v5  ;;  %v323_v23 = vsub.f32 %v267_v14, %v295_v52  ;;  %v409_v26 = vrot.slane %v1489_v12, 1  ;;  %v447_v37 = vadd.f32 %v446_v63, %v445_v58 }
  0x93   : > { %v313_v38 = vsel %vm1472_vm6, %v310_v43, %v307_v7  ;;  %v316_v2 = vmul.f32 0.6931472, %v913_v13  ;;  %v324_v16 = vsub.f32 %v268_v19, %v304_v57  ;;  %v466_v44 = vadd.f32 %v465_v51, %v464_v31 }
  0x94   : > { %v325_v45 = vsub.f32 %v269_v8, %v313_v38  ;;  %v352_v4 = vmul.f32 %v323_v23, %v1320_v32  ;;  %v1520_v17 = vmul.f32 %v323_v23, %v323_v23  ;;  %v385_v9 = vsel %vm1354_vm8, %v323_v23, 0.0 }
  0x95   : > { %v322_v14 = vsel %vm1479_vm7, %v319_v61, %v316_v2  ;;  %v353_v18 = vmul.f32 %v324_v16, %v1322_v33  ;;  %v1527_v43 = vmul.f32 %v324_v16, %v324_v16  ;;  %v386_v11 = vsel %vm1359_vm9, %v324_v16, 0.0 }
  0x96   : > { %v326_v19 = vsub.f32 %v270_v20, %v322_v14  ;;  %v1534_v21 = vmul.f32 %v325_v45, %v1324_v34  ;;  %v1536_v32 = vmul.f32 %v325_v45, %v325_v45  ;;  %v387_v8 = vsel %vm1376_vm11, %v325_v45, 0.0 }
  0x97   : > { %v389_v46 = vadd.f32 %v386_v11, %v385_v9  ;;  %v411_v33 = vsel %vm1354_vm8, %v352_v4, 0.0  ;;  %v412_v29 = vsel %vm1359_vm9, %v353_v18, 0.0  ;;  %v424_v22 = vsel %vm1354_vm8, %v1520_v17, 0.0 }
  0x98   : > { %v1548_v20 = vmul.f32 %v326_v19, %v1328_v39  ;;  %v1550_v34 = vmul.f32 %v326_v19, %v326_v19  ;;  %v388_v28 = vsel %vm1394_vm13, %v326_v19, 0.0  ;;  %v413_v36 = vsel %vm1376_vm11, %v1534_v21, 0.0 }
  0x99   : > { %v390_v50 = vadd.f32 %v389_v46, %v387_v8  ;;  %v415_v58 = vadd.f32 %v412_v29, %v411_v33  ;;  %v425_v25 = vsel %vm1359_vm9, %v1527_v43, 0.0  ;;  %v426_v39 = vsel %vm1376_vm11, %v1536_v32, 0.0 }
  0x9a   : > { %v414_v55 = vsel %vm1394_vm13, %v1548_v20, 0.0  ;;  %v427_v27 = vsel %vm1394_vm13, %v1550_v34, 0.0  ;;  %v428_v35 = vadd.f32 %v425_v25, %v424_v22  ;;  %v491_v40 = vrot.slane %v1497_v6, 4 }
  0x9b   : > { %v391_v41 = vadd.f32 %v390_v50, %v388_v28  ;;  %v416_v31 = vadd.f32 %v415_v58, %v413_v36  ;;  %v467_v42 = vrot.slane %v466_v44, 2  ;;  %v471_v56 = vsel %vm1413_vm15, %v323_v23, 0.0 }
  0x9c   : > { %v429_v59 = vadd.f32 %v428_v35, %v426_v39  ;;  %v448_v62 = vrot.slane %v447_v37, 1  ;;  %v472_v60 = vsel %vm1423_vm4, %v324_v16, 0.0  ;;  %v473_v61 = vsel %vm1440_vm1, %v325_v45, 0.0 }
  0x9d   : > { %v392_v63 = vrot.slane %v391_v41, 4  ;;  %v417_v3 = vadd.f32 %v416_v31, %v414_v55  ;;  %v468_v1 = vadd.f32 %v467_v42, %v466_v44  ;;  %v475_v5 = vadd.f32 %v472_v60, %v471_v56 }
  0x9e   : > { %v410_v51 = vadd.f32 %v409_v26, %v1489_v12  ;;  %v430_v52 = vadd.f32 %v429_v59, %v427_v27  ;;  %v474_v7 = vsel %vm1456_vm2, %v326_v19, 0.0  ;;  %v497_v13 = vsel %vm1413_vm15, %v352_v4, 0.0 }
  0x9f   : > { %vm536_vm8 = vcmask 1040384   ;;  %v393_v57 = vadd.f32 %v392_v63, %v391_v41  ;;  %v418_v23 = vrot.slane %v417_v3, 4  ;;  %v476_v38 = vadd.f32 %v475_v5, %v473_v61 }
  0xa0   : > { %v498_v2 = vsel %vm1423_vm4, %v353_v18, 0.0  ;;  %vm538_vm9 = vcmask 1041408   ;;  %v431_v16 = vrot.slane %v430_v52, 4  ;;  %v449_v44 = vadd.f32 %v448_v62, %v447_v37 }
  0xa1   : > { %v469_v45 = vrot.slane %v468_v1, 1  ;;  %v492_v12 = vadd.f32 %v491_v40, %v1497_v6  ;;  %vm540_vm10 = vcmask 1042432   ;;  %v394_v26 = vrot.slane %v393_v57, 2 }
  0xa2   : > { %v419_v9 = vadd.f32 %v418_v23, %v417_v3  ;;  %v477_v14 = vadd.f32 %v476_v38, %v474_v7  ;;  %v499_v4 = vsel %vm1440_vm1, %v1534_v21, 0.0  ;;  %vm542_vm11 = vcmask 1043456  }
  0xa3   : > { %v432_v11 = vadd.f32 %v431_v16, %v430_v52  ;;  %v500_v18 = vsel %vm1456_vm2, %v1548_v20, 0.0  ;;  %v501_v19 = vadd.f32 %v498_v2, %v497_v13  ;;  %v510_v37 = vsel %vm1413_vm15, %v1520_v17, 0.0 }
  0xa4   : > { %vm544_vm12 = vcmask 1044480   ;;  %v395_v6 = vadd.f32 %v394_v26, %v393_v57  ;;  %v420_v8 = vrot.slane %v419_v9, 2  ;;  %v478_v46 = vrot.slane %v477_v14, 4 }
  0xa5   : > { %v511_v33 = vsel %vm1423_vm4, %v1527_v43, 0.0  ;;  %v433_v21 = vrot.slane %v432_v11, 2  ;;  %v470_v29 = vadd.f32 %v469_v45, %v468_v1  ;;  %v493_v22 = vrot.slane %v492_v12, 2 }
  0xa6   : > { %v502_v28 = vadd.f32 %v501_v19, %v499_v4  ;;  %v396_v36 = vrot.slane %v395_v6, 1  ;;  %v421_v50 = vadd.f32 %v420_v8, %v419_v9  ;;  %v479_v20 = vadd.f32 %v478_v46, %v477_v14 }
  0xa7   : > { %v512_v15 = vsel %vm1440_vm1, %v1536_v32, 0.0  ;;  %v434_v17 = vadd.f32 %v433_v21, %v432_v11  ;;  %v513_v25 = vsel %vm1456_vm2, %v1550_v34, 0.0  ;;  %v514_v39 = vadd.f32 %v511_v33, %v510_v37 }
  0xa8   : > { %v503_v58 = vadd.f32 %v502_v28, %v500_v18  ;;  %v397_v24 = vadd.f32 %v396_v36, %v395_v6  ;;  %v422_v43 = vrot.slane %v421_v50, 1  ;;  %v480_v55 = vrot.slane %v479_v20, 2 }
  0xa9   : > { %v528_v27 = vadd.f32 %v1506_v49, %v525_v0  ;;  %v435_v35 = vrot.slane %v434_v17, 1  ;;  %v494_v40 = vadd.f32 %v493_v22, %v492_v12  ;;  %v515_v32 = vadd.f32 %v514_v39, %v512_v15 }
  0xaa   : > { %v504_v41 = vrot.slane %v503_v58, 4  ;;  %v423_v31 = vadd.f32 %v422_v43, %v421_v50  ;;  %v481_v42 = vadd.f32 %v480_v55, %v479_v20  ;;  %v537_v56 = vsel %vm536_vm8, %v1504_v10, %v397_v24 }
  0xab   : > { %v529_v34 = vadd.f32 %v528_v27, %v526_v48  ;;  %v436_v59 = vadd.f32 %v435_v35, %v434_v17  ;;  %v516_v62 = vadd.f32 %v515_v32, %v513_v25  ;;  %v539_v53 = vsel %vm538_vm9, %v537_v56, %v410_v51 }
  0xac   : > { %v505_v30 = vadd.f32 %v504_v41, %v503_v58  ;;  %v482_v0 = vrot.slane %v481_v42, 1  ;;  %v541_v60 = vsel %vm540_vm10, %v539_v53, %v423_v31  ;;  %vm546_vm13 = vcmask 1045504  }
  0xad   : > { %v530_v49 = vrot.slane %v529_v34, 4  ;;  %v517_v63 = vrot.slane %v516_v62, 4  ;;  %v543_v47 = vsel %vm542_vm11, %v541_v60, %v436_v59  ;;  %vm548_vm14 = vcmask 1046528  }
  0xae   : > { %v506_v61 = vrot.slane %v505_v30, 2  ;;  %v483_v54 = vadd.f32 %v482_v0, %v481_v42  ;;  %v495_v48 = vrot.slane %v494_v40, 1  ;;  %v545_v10 = vsel %vm544_vm12, %v543_v47, %v449_v44 }
  0xaf   : > { %v531_v3 = vadd.f32 %v530_v49, %v529_v34  ;;  %v518_v5 = vadd.f32 %v517_v63, %v516_v62  ;;  %v547_v52 = vsel %vm546_vm13, %v545_v10, %v470_v29  ;;  %v1102_v11 = vmov (!%p830_p8), 0.0  }
  0xb0   : > { %v507_v1 = vadd.f32 %v506_v61, %v505_v30  ;;  %v549_v51 = vsel %vm548_vm14, %v547_v52, %v483_v54  ;;  %v496_v23 = vadd.f32 %v495_v48, %v494_v40  ;;  %557 = vst [vmem:[#allocation2] sm:$0xff] (!%p830_p8), %v1102_v11  ;;  %558 = vst [vmem:[#allocation2 + $0x8] sm:$0xf] (!%p830_p8), %v1102_v11 }
  0xb1   : > { %v532_v7 = vrot.slane %v531_v3, 2  ;;  %v519_v57 = vrot.slane %v518_v5, 2 }
  0xb2   : > { %v508_v13 = vrot.slane %v507_v1, 1 }
  0xb3   : > { %v533_v38 = vadd.f32 %v532_v7, %v531_v3  ;;  %v520_v16 = vadd.f32 %v519_v57, %v518_v5 }
  0xb4   : > { %v509_v2 = vadd.f32 %v508_v13, %v507_v1  ;;  %556 = sbr.rel (%p830_p8) target bundleno = 187 (0xbb), region = 48 }
  0xb5   : > { %v534_v45 = vrot.slane %v533_v38, 1  ;;  %v521_v12 = vrot.slane %v520_v16, 1 }
  0xb6   : > { %v550_v9 = vsel %vm536_vm8, %v496_v23, %v509_v2 }
  0xb7   : > { %v535_v26 = vadd.f32 %v534_v45, %v533_v38  ;;  %v522_v14 = vadd.f32 %v521_v12, %v520_v16 }
  0xb9   : > { %v551_v4 = vsel %vm538_vm9, %v550_v9, %v522_v14 }
  0xba   : > { %v552_v44 = vsel %vm540_vm10, %v551_v4, %v535_v26 }
  0xbb PF: > { %v559_v18 = vld [vmem:[#allocation2] sm:$0xff]  ;;  %v560_v19 = vld [vmem:[#allocation2 + $0x8] sm:$0xf]  ;;  %p831_p0 = scmp.ne.s32.totalorder %s1143_s16, 3 }
  0xbc   : > { %v561_v37 = vadd.f32 %v559_v18, %v549_v51  ;;  %v562_v6 = vadd.f32 %v560_v19, %v552_v44  ;;  %vm713_vm8 = vcmask (!%p831_p0), 0  }
  0xbd   : > { %568 = sbr.rel (%p831_p0) target bundleno = 418 (0x1a2), region = 52 }
  0xbe   : > { %563 = vst [vmem:[#allocation2] sm:$0xff] %v561_v37  ;;  %564 = vst [vmem:[#allocation2 + $0x8] sm:$0xf] %v562_v6 }
  0xc5   : > { %v569_v8 = vld [vmem:[#allocation2] sm:$0xff]  ;;  %v570_v46 = vld [vmem:[#allocation2 + $0x8] sm:$0xf] }
  0xc6   : > { %571 = vadd.xlane.f32.xlu0 %v569_v8  ;;  %v573_v33 = vsel %vm542_vm11, %v570_v46, 0.0 }
  0xca   : > { %574 = vadd.xlane.f32.xlu0 %v573_v33 }
 0x153   : > { %v1623_v21 = vpop.xlane.xlu0 %571 }
 0x154   : > { %v577_v29 = vrot.slane %v1623_v21, 7  ;;  %v581_v22 = vrot.slane %v1623_v21, 6  ;;  %v832_v28 = vadd.f32 -1.0, %v1623_v21  ;;  %v585_v51 = vrot.slane %v1623_v21, 5 }
 0x155   : > { %vm651_vm7 = vcmp.gt.f32.partialorder %v1623_v21, 0.0 }
 0x156   : > { %914 = vrcp.f32 %v577_v29  ;;  %v608_v36 = vrot.slane %v832_v28, 4  ;;  %v620_v50 = vrot.slane %v832_v28, 3 }
 0x157   : > { %916 = vrcp.f32 %v581_v22  ;;  %v1628_v20 = vpop.xlane.xlu0 %574 }
 0x158   : > { %918 = vrcp.f32 %v608_v36 }
 0x159   : > { %920 = vrcp.f32 %v620_v50 }
 0x160   : > { %v915_v15 = vpop.eup %914 }
 0x161   : > { %v917_v17 = vpop.eup %916  ;;  %v1631_v58 = vmul.f32 %v915_v15, %v1623_v21 }
 0x162   : > { %v1634_v25 = vmul.f32 %v917_v17, %v1623_v21  ;;  %v1637_v39 = vmul.f32 %v917_v17, %v1628_v20  ;;  %v919_v62 = vpop.eup %918 }
 0x163   : > { %v598_v24 = vrot.slane %v1631_v58, 1  ;;  %v921_v49 = vpop.eup %920 }
 0x164   : > { %v612_v43 = vrot.slane %v1634_v25, 2  ;;  %v669_v55 = vrot.slane %v1637_v39, 2  ;;  %v590_v29 = vrot.slane %v1634_v25, 1  ;;  %v660_v36 = vrot.slane %v1637_v39, 1 }
 0x165   : > { %v600_v27 = vmul.f32 %v598_v24, %v1623_v21 }
 0x166   : > { %v614_v35 = vmul.f32 %v612_v43, %v1623_v21  ;;  %v671_v40 = vmul.f32 %v669_v55, %v1623_v21  ;;  %v592_v15 = vmul.f32 %v590_v29, %v1631_v58  ;;  %v662_v17 = vmul.f32 %v660_v36, %v1631_v58 }
 0x167   : > { %v601_v41 = vmul.f32 %v600_v27, %v598_v24 }
 0x168   : > { %v615_v32 = vmul.f32 %v614_v35, %v612_v43  ;;  %v672_v31 = vmul.f32 %v671_v40, %v669_v55  ;;  %v594_v43 = vrot.slane %v592_v15, 6  ;;  %v664_v27 = vrot.slane %v662_v17, 6 }
 0x169   : > { %v603_v42 = vrot.slane %v601_v41, 4 }
 0x16a   : > { %v617_v34 = vrot.slane %v615_v32, 3  ;;  %v674_v56 = vrot.slane %v672_v31, 3 }
 0x16b   : > { %v605_v59 = vsub.f32 %v1623_v21, %v603_v42  ;;  %v667_v30 = vsub.f32 %v1628_v20, %v603_v42 }
 0x16c   : > { %v619_v53 = vsub.f32 %v1623_v21, %v617_v34  ;;  %v676_v0 = vsub.f32 %v1628_v20, %v674_v56 }
 0x16d   : > { %v611_v60 = vmul.f32 %v919_v62, %v605_v59  ;;  %v668_v61 = vmul.f32 %v919_v62, %v667_v30 }
 0x16e   : > { %v623_v63 = vmul.f32 %v921_v49, %v619_v53  ;;  %v677_v47 = vmul.f32 %v921_v49, %v676_v0 }
 0x16f   : > { %v624_v54 = vmax.f32 %v611_v60, 0.0  ;;  %v678_v48 = vmax.f32 %v668_v61, 0.0 }
 0x170   : > { %v632_v3 = vmax.f32 %v623_v63, 0.0  ;;  %v686_v10 = vmax.f32 %v677_v47, 0.0 }
 0x171   : > { %922 = vrsqrt.f32 %v624_v54  ;;  %vm627_vm15 = vcmp.eq.f32.partialorder %v624_v54, inf  ;;  %vm629_vm4 = vcmp.eq.f32.partialorder %v624_v54, 0.0  ;;  %v630_v23 = vand.u32 2147483648, %v624_v54 }
 0x172   : > { %924 = vrsqrt.f32 %v632_v3  ;;  %vm635_vm0 = vcmp.eq.f32.partialorder %v632_v3, inf  ;;  %v638_v38 = vand.u32 2147483648, %v632_v3  ;;  %vm637_vm1 = vcmp.eq.f32.partialorder %v632_v3, 0.0 }
 0x173   : > { %926 = vrsqrt.f32 %v678_v48  ;;  %vm681_vm2 = vcmp.eq.f32.partialorder %v678_v48, inf  ;;  %vm689_vm3 = vcmp.eq.f32.partialorder %v686_v10, inf  ;;  %v692_v9 = vand.u32 2147483648, %v686_v10 }
 0x174   : > { %928 = vrsqrt.f32 %v686_v10  ;;  %vm691_vm5 = vcmp.eq.f32.partialorder %v686_v10, 0.0  ;;  %v684_v18 = vand.u32 2147483648, %v678_v48  ;;  %vm683_vm6 = vcmp.eq.f32.partialorder %v678_v48, 0.0 }
 0x175   : > { %930 = vrcp.f32 %v585_v51 }
 0x17b   : > { %v923_v1 = vpop.eup %922 }
 0x17c   : > { %v925_v5 = vpop.eup %924  ;;  %v626_v52 = vmul.f32 %v923_v1, %v624_v54 }
 0x17d   : > { %v927_v7 = vpop.eup %926  ;;  %v634_v13 = vmul.f32 %v925_v5, %v632_v3 }
 0x17e   : > { %v929_v57 = vpop.eup %928  ;;  %v680_v2 = vmul.f32 %v927_v7, %v678_v48  ;;  %v628_v16 = vsel %vm627_vm15, %v624_v54, %v626_v52 }
 0x17f   : > { %v636_v45 = vsel %vm635_vm0, %v632_v3, %v634_v13  ;;  %v688_v12 = vmul.f32 %v929_v57, %v686_v10  ;;  %v631_v11 = vsel %vm629_vm4, %v630_v23, %v628_v16  ;;  %v931_v24 = vpop.eup %930 }
 0x180   : > { %v639_v26 = vsel %vm637_vm1, %v638_v38, %v636_v45  ;;  %v682_v4 = vsel %vm681_vm2, %v678_v48, %v680_v2  ;;  %v588_v55 = vmul.f32 %v931_v24, %v1623_v21  ;;  %v658_v40 = vmul.f32 %v931_v24, %v1628_v20 }
 0x181   : > { %v641_v14 = vrot.slane %v639_v26, 1  ;;  %v690_v44 = vsel %vm689_vm3, %v686_v10, %v688_v12  ;;  %v685_v8 = vsel %vm683_vm6, %v684_v18, %v682_v4 }
 0x182   : > { %v693_v19 = vsel %vm691_vm5, %v692_v9, %v690_v44  ;;  %v596_v35 = vsub.f32 %v588_v55, %v594_v43  ;;  %v666_v32 = vsub.f32 %v658_v40, %v664_v27 }
 0x183   : > { %v643_v37 = vmul.f32 %v641_v14, %v631_v11  ;;  %v695_v6 = vrot.slane %v693_v19, 1 }
 0x185   : > { %v644_v46 = vadd.f32 1e-06, %v643_v37  ;;  %v697_v33 = vmul.f32 %v695_v6, %v685_v8 }
 0x187   : > { %v646_v22 = vrot.slane %v644_v46, 1  ;;  %v698_v28 = vadd.f32 1e-06, %v697_v33 }
 0x189   : > { %932 = vrcp.f32 %v646_v22  ;;  %v700_v50 = vrot.slane %v698_v28, 1 }
 0x18b   : > { %934 = vrcp.f32 %v700_v50 }
 0x193   : > { %v933_v25 = vpop.eup %932 }
 0x194   : > { %v649_v41 = vmul.f32 %v933_v25, %v596_v35 }
 0x195   : > { %v935_v31 = vpop.eup %934 }
 0x196   : > { %v650_v39 = vand.u32 2147483647, %v649_v41  ;;  %v703_v42 = vmul.f32 %v935_v31, %v666_v32 }
 0x198   : > { %v704_v34 = vand.u32 2147483647, %v703_v42  ;;  %v653_v56 = vrot.slane %v650_v39, 3 }
 0x19a   : > { %v706_v59 = vrot.slane %v704_v34, 3  ;;  %v655_v62 = vsel %vm651_vm7, %v653_v56, 0.0 }
 0x19c   : > { %v708_v58 = vsel %vm651_vm7, %v706_v59, 0.0 }
 0x19d   : > { %v710_v30 = vrot.slane %v708_v58, 6 }
 0x19f   : > { %v712_v53 = vadd.f32 %v710_v30, %v655_v62 }
 0x1a1   : > { %714 = vst.msk [vmem:[#allocation9] sm:$0x1] %vm713_vm8, %v712_v53 }
 0x1a2 PF: > { %p859_p7 = scmp.eq.s32.totalorder %s1143_s16, 3  ;;  %s1103_s15 = smov [#allocation9]  }
 0x1a3   : > { %s722_s24 = sshll.u32 %s1103_s15, 4  ;;  %s723_s24 = int_to_ptr.vmem [resolvable:$true] %s722_s24 }
 0x1a4   : > { %s1026_s27 = scalar_lea.vmem %s723_s24, 16  ;;  %s1032_s29 = scalar_lea.vmem %s723_s24, 32 }
 0x1a5   : > { %p1027_p12 = scmp.ne.s32.totalorder %s723_s24, %s1026_s27  ;;  %p1033_p5 = scmp.lt.s32.totalorder %s723_s24, %s723_s24 }
 0x1a6   : > { %p1034_p6 = scmp.lt.s32.totalorder %s1032_s29, %s1026_s27 }
 0x1a7   : > { %p1028_p2 = pnand %p1027_p12, %p859_p7 }
 0x1a8   : > { %p1035_p1 = por %p1034_p6, %p1033_p5 }
 0x1a9   : > { %p1029_p3 = pneg %p1028_p2 }
 0x1ab   : > { %p1036_p4 = pnand %p1035_p1, %p1029_p3 }
 0x1ad   : > { %1039 = shalt.err (!%p1036_p4)
}
 0x1ae   : > { %s1040_s10 = scalar_lea.hbm %s1697_s3, 16 }
 0x1af   : > { %p1041_p11 = scmp.ne.s32.totalorder %s1697_s3, %s1040_s10  ;;  %p1046_p10 = scmp.lt.u32.totalorder %s1040_s10, %s1697_s3 }
 0x1b1   : > { %p1042_p13 = pnand %p1041_p11, %p859_p7 }
 0x1b3   : > { %p1043_p9 = pneg %p1042_p13 }
 0x1b5   : > { %p1048_p8 = pnand %p1046_p10, %p1043_p9 }
 0x1b7   : > { %1051 = shalt.err (!%p1048_p8)
}
 0x1b8   : > { %845 = dma.vmem_to_hbm [thread:$0]  (%p859_p7), %s723_s24, 16, %s1697_s3, [#allocation5]  }
 0x1b9   : > { %1077 = dma.done.wait (%p859_p7), [#allocation5], 16  }
 0x1ba   : > { %1079 = vsyncadd (%p859_p7), [#allocation5], 4294967280 }
 0x1bb PF: > { %p17_p0 = scmp.ge.s32.totalorder %s1146_s17, 6   ;;  %s1737_s12 = smov %s1086_s13 }
 0x1bc   : > { %s1738_s13 = smov %s1090_s14  ;;  %s1739_s14 = smov %s1156_s20 }
 0x1bd   : > { %s1740_s15 = smov %s1146_s17  ;;  %19 = sbr.rel (!%p17_p0) target bundleno = 6 (0x6), region = 101 }
 0x1c4   :  { %735 = vsyncpa [#allocation4], 1 }
 0x1c5   :  { %737 = vsyncpa [#allocation4 + $0x1], 1 }
 0x1c6   :  { %738 = vsyncpa [#allocation7], 1 }
 0x1c7   :  { %740 = vsyncpa [#allocation7 + $0x1], 1 }
 0x1c8   :  { %741 = vsyncpa [#allocation5], 1 }
 0x1c9   :  { %743 = vsyncpa [#allocation5 + $0x1], 1 }

</bundles_post_ra>
